<compile_context>
chip_gen: v7x
topology: tpu7x:2x2x1
jax: 0.10.0
libtpu: 0.0.40
codegen_flags: <defaults>
</compile_context>

<pallas_src>
import functools

import jax
import jax.numpy as jnp
from jax.experimental import pallas as pl
from jax.experimental.pallas import tpu as pltpu


def _round_up(v, m):
    return -(-v // m) * m


def _cdc_cross_kernel(W, x_ref, w_ref, m_ref, o_ref):
    """One batch block (G images laid side by side on the lane axis).

    x_ref: (C_in_pad, L)        L = G*H*W, images concatenated on lanes
    w_ref: (C_out, 5*C_in_pad)  packed [up, left, center', right, down] taps
                                (center' already has -theta*kernel_diff folded)
    m_ref: (4, L)               border masks: [w!=0, w!=W-1, h!=0, h!=H-1]
    o_ref: (C_out, L)           lane-dense output block
    """
    x = x_ref[...]                                   # (C_in_pad, L)
    L = x.shape[-1]

    left_m = m_ref[0:1, :]                           # col != 0
    right_m = m_ref[1:2, :]                          # col != W-1
    up_m = m_ref[2:3, :]                             # row != 0
    down_m = m_ref[3:4, :]                           # row != H-1

    # Circular rolls on the lane axis (XLU); wrapped values (image borders and
    # cross-image bleed) are exactly the positions zeroed by the masks.
    up = pltpu.roll(x, W, 1) * up_m                  # x(h-1, w)
    left = pltpu.roll(x, 1, 1) * left_m              # x(h, w-1)
    right = pltpu.roll(x, L - 1, 1) * right_m        # x(h, w+1)
    down = pltpu.roll(x, L - W, 1) * down_m          # x(h+1, w)

    # Sublane-aligned im2col slab (each plane is a multiple of 8 rows); row
    # order must match the tap packing of w_ref.
    patches = jnp.concatenate([up, left, x, right, down], axis=0)

    o_ref[...] = jnp.dot(w_ref[...], patches,
                         preferred_element_type=jnp.float32).astype(o_ref.dtype)


def conv2d_hori_veri_cross(x_nchw, weight_1x5, theta=0.7, images_per_block=None):
    """Forward pass of Conv2d_Hori_Veri_Cross.

    x_nchw:     (N, C_in, H, W)     float32
    weight_1x5: (C_out, C_in, 1, 5) float32 (nn.Conv2d(..., (1,5), bias=False))
    returns     (N, C_out, H, W)    float32
    """
    N, C_in, H, W = x_nchw.shape
    C_out = weight_1x5.shape[0]
    HW = H * W
    C_in_pad = _round_up(C_in, 8)

    # ---- pack weights: 5 nonzero taps of the cross, theta folded into center.
    #   out = cross_conv3x3(x) - theta * conv1x1(x, sum(w))   (exact fold)
    w5 = weight_1x5[:, :, 0, :].astype(jnp.float32)            # (C_out, C_in, 5)
    kernel_diff = w5.sum(axis=-1)                              # (C_out, C_in)
    center = w5[:, :, 2] - jnp.float32(theta) * kernel_diff    # (C_out, C_in)
    taps = jnp.stack(
        [w5[:, :, 0], w5[:, :, 1], center, w5[:, :, 3], w5[:, :, 4]],
        axis=1)                                                # (C_out, 5, C_in)
    if C_in_pad != C_in:                                       # sublane-align K
        taps = jnp.pad(taps, ((0, 0), (0, 0), (0, C_in_pad - C_in)))
    w_mat = taps.reshape(C_out, 5 * C_in_pad)                  # (C_out, 5*C_in_pad)

    # ---- batch blocking: G images per grid step, >=2 steps by default (v7x).
    if images_per_block is None:
        images_per_block = max(1, N // 2)
    G = max(1, min(images_per_block, N))
    n_blocks = -(-N // G)
    N_pad = n_blocks * G
    L = G * HW

    # ---- input as (C_in_pad, N_pad*HW): channel-pad to 8, zero-pad batch tail.
    x_t = jnp.transpose(x_nchw.astype(jnp.float32).reshape(N, C_in, HW),
                        (1, 0, 2)).reshape(C_in, N * HW)
    pad_r, pad_c = C_in_pad - C_in, (N_pad - N) * HW
    if pad_r or pad_c:
        x_t = jnp.pad(x_t, ((0, pad_r), (0, pad_c)))

    # ---- border masks for the rolled taps (periodic per image within a block).
    idx = jnp.arange(L, dtype=jnp.int32)
    col = idx % W
    row = (idx // W) % H
    masks = jnp.stack([col != 0, col != W - 1,
                       row != 0, row != H - 1]).astype(jnp.float32)   # (4, L)

    kernel = functools.partial(_cdc_cross_kernel, W)
    out_t = pl.pallas_call(
        kernel,
        out_shape=jax.ShapeDtypeStruct((C_out, N_pad * HW), jnp.float32),
        grid_spec=pltpu.PrefetchScalarGridSpec(
            num_scalar_prefetch=0,
            grid=(n_blocks,),
            in_specs=[
                pl.BlockSpec((C_in_pad, L), lambda g: (0, g)),
                pl.BlockSpec((C_out, 5 * C_in_pad), lambda g: (0, 0)),  # resident
                pl.BlockSpec((4, L), lambda g: (0, 0)),                 # resident
            ],
            out_specs=pl.BlockSpec((C_out, L), lambda g: (0, g)),
        ),
        compiler_params=pltpu.CompilerParams(
            dimension_semantics=("parallel",)),
    )(x_t, w_mat, masks)

    out = out_t.reshape(C_out, N_pad, H, W)[:, :N]
    return jnp.transpose(out, (1, 0, 2, 3))                    # (N, C_out, H, W)


def _reference(x_nchw, weight_1x5, theta=0.7):
    """Pure-JAX reference mirroring the PyTorch forward (unfused)."""
    C_out, C_in = weight_1x5.shape[0], weight_1x5.shape[1]
    w = weight_1x5[:, :, 0, :]
    w3 = jnp.zeros((C_out, C_in, 3, 3), dtype=jnp.float32)
    w3 = w3.at[:, :, 0, 1].set(w[:, :, 0])
    w3 = w3.at[:, :, 1, 0].set(w[:, :, 1])
    w3 = w3.at[:, :, 1, 1].set(w[:, :, 2])
    w3 = w3.at[:, :, 1, 2].set(w[:, :, 3])
    w3 = w3.at[:, :, 2, 1].set(w[:, :, 4])
    out_normal = jax.lax.conv_general_dilated(
        x_nchw, w3, window_strides=(1, 1), padding=((1, 1), (1, 1)),
        dimension_numbers=("NCHW", "OIHW", "NCHW"))
    kd = weight_1x5.sum(axis=(2, 3))[:, :, None, None]
    out_diff = jax.lax.conv_general_dilated(
        x_nchw, kd, window_strides=(1, 1), padding=((0, 0), (0, 0)),
        dimension_numbers=("NCHW", "OIHW", "NCHW"))
    return out_normal - theta * out_diff


if __name__ == "__main__":
    key = jax.random.PRNGKey(0)
    kx, kw = jax.random.split(key)

    N, C_in, H, W, C_out = 2, 4, 16, 16, 8
    theta = 0.7

    x = jax.random.normal(kx, (N, C_in, H, W), dtype=jnp.float32)
    weight_1x5 = 0.1 * jax.random.normal(kw, (C_out, C_in, 1, 5), dtype=jnp.float32)

    out = conv2d_hori_veri_cross(x, weight_1x5, theta=theta)
    out = jax.block_until_ready(out)

    assert out.shape == (N, C_out, H, W), out.shape
    ref = _reference(x, weight_1x5, theta=theta)
    assert jnp.allclose(out, ref, atol=1e-4, rtol=1e-4), "mismatch vs reference"

    print("KERNEL_OK")
</pallas_src>

<mosaic_0001>
module attributes {stable_mosaic.version = 11 : i64} {
  func.func @_cdc_cross_kernel(%arg0: i32, %arg1: memref<8x256xf32, #tpu.memory_space<vmem>>, %arg2: memref<8x40xf32, #tpu.memory_space<vmem>>, %arg3: memref<4x256xf32, #tpu.memory_space<vmem>>, %arg4: memref<8x256xf32, #tpu.memory_space<vmem>>) attributes {dimension_semantics = [#tpu.dimension_semantics<parallel>], iteration_bounds = array<i64: 2>, scalar_prefetch = 0 : i64, scratch_operands = 0 : i64, tpu.core_type = #tpu.core_type<tc>, window_params = [{transform_indices = @transform_0, window_bounds = array<i64: 8, 256>}, {pipeline_mode = #tpu.pipeline_mode<synchronous>, transform_indices = @transform_1, window_bounds = array<i64: 8, 40>}, {pipeline_mode = #tpu.pipeline_mode<synchronous>, transform_indices = @transform_2, window_bounds = array<i64: 4, 256>}, {transform_indices = @transform_3, window_bounds = array<i64: 8, 256>}]} {
    %c0 = arith.constant 0 : index
    %c0_0 = arith.constant 0 : index
    %0 = vector.load %arg1[%c0, %c0_0] : memref<8x256xf32, #tpu.memory_space<vmem>>, vector<8x256xf32>
    %c0_1 = arith.constant 0 : index
    %c0_2 = arith.constant 0 : index
    %1 = vector.load %arg3[%c0_1, %c0_2] : memref<4x256xf32, #tpu.memory_space<vmem>>, vector<1x256xf32>
    %c1 = arith.constant 1 : index
    %c0_3 = arith.constant 0 : index
    %2 = vector.load %arg3[%c1, %c0_3] : memref<4x256xf32, #tpu.memory_space<vmem>>, vector<1x256xf32>
    %c2 = arith.constant 2 : index
    %c0_4 = arith.constant 0 : index
    %3 = vector.load %arg3[%c2, %c0_4] : memref<4x256xf32, #tpu.memory_space<vmem>>, vector<1x256xf32>
    %c3 = arith.constant 3 : index
    %c0_5 = arith.constant 0 : index
    %4 = vector.load %arg3[%c3, %c0_5] : memref<4x256xf32, #tpu.memory_space<vmem>>, vector<1x256xf32>
    %c16_i32 = arith.constant 16 : i32
    %5 = tpu.dynamic_rotate %0 by %c16_i32 dim 1 : vector<8x256xf32>, i32 -> vector<8x256xf32>
    %6 = vector.broadcast %3 : vector<1x256xf32> to vector<8x256xf32>
    %7 = arith.mulf %5, %6 : vector<8x256xf32>
    %c1_i32 = arith.constant 1 : i32
    %8 = tpu.dynamic_rotate %0 by %c1_i32 dim 1 : vector<8x256xf32>, i32 -> vector<8x256xf32>
    %9 = vector.broadcast %1 : vector<1x256xf32> to vector<8x256xf32>
    %10 = arith.mulf %8, %9 : vector<8x256xf32>
    %c255_i32 = arith.constant 255 : i32
    %11 = tpu.dynamic_rotate %0 by %c255_i32 dim 1 : vector<8x256xf32>, i32 -> vector<8x256xf32>
    %12 = vector.broadcast %2 : vector<1x256xf32> to vector<8x256xf32>
    %13 = arith.mulf %11, %12 : vector<8x256xf32>
    %c240_i32 = arith.constant 240 : i32
    %14 = tpu.dynamic_rotate %0 by %c240_i32 dim 1 : vector<8x256xf32>, i32 -> vector<8x256xf32>
    %15 = vector.broadcast %4 : vector<1x256xf32> to vector<8x256xf32>
    %16 = arith.mulf %14, %15 : vector<8x256xf32>
    %17 = tpu.concatenate %7, %10, %0, %13, %16 in 0 : vector<8x256xf32>, vector<8x256xf32>, vector<8x256xf32>, vector<8x256xf32>, vector<8x256xf32> -> vector<40x256xf32>
    %c0_6 = arith.constant 0 : index
    %c0_7 = arith.constant 0 : index
    %18 = vector.load %arg2[%c0_6, %c0_7] : memref<8x40xf32, #tpu.memory_space<vmem>>, vector<8x40xf32>
    %cst = arith.constant dense<0.000000e+00> : vector<8x256xf32>
    %19 = tpu.matmul %18, %17, %cst {dimension_numbers = #tpu.dot_dimension_numbers<[1], [0], [0], [1], [0, 0, 1, 1], [], []>} : vector<8x40xf32>, vector<40x256xf32>, vector<8x256xf32> -> vector<8x256xf32>
    %c0_8 = arith.constant 0 : index
    %c0_9 = arith.constant 0 : index
    %20 = vector.load %arg4[%c0_8, %c0_9] : memref<8x256xf32, #tpu.memory_space<vmem>>, vector<8x256xf32>
    tpu.vector_store %arg4[%c0_8, %c0_9], %19 {strides = array<i32>} : memref<8x256xf32, #tpu.memory_space<vmem>>, vector<8x256xf32>,
    return
  }
  func.func @transform_0(%arg0: i32) -> (i32, i32) {
    %c0_i32 = arith.constant 0 : i32
    %c0_i32_0 = arith.constant 0 : i32
    return %c0_i32, %arg0 : i32, i32
  }
  func.func @transform_1(%arg0: i32) -> (i32, i32) {
    %c0_i32 = arith.constant 0 : i32
    %c0_i32_0 = arith.constant 0 : i32
    %c0_i32_1 = arith.constant 0 : i32
    return %c0_i32, %c0_i32_0 : i32, i32
  }
  func.func @transform_2(%arg0: i32) -> (i32, i32) {
    %c0_i32 = arith.constant 0 : i32
    %c0_i32_0 = arith.constant 0 : i32
    %c0_i32_1 = arith.constant 0 : i32
    return %c0_i32, %c0_i32_0 : i32, i32
  }
  func.func @transform_3(%arg0: i32) -> (i32, i32) {
    %c0_i32 = arith.constant 0 : i32
    %c0_i32_0 = arith.constant 0 : i32
    return %c0_i32, %arg0 : i32, i32
  }
}

</mosaic_0001>

<bundles_post_ra>
// kernel: tpu_custom_call.1
= control target key start
LH: loop header
LB: loop body
LE: loop exit
PB: predicated region body
PF: predicated region fallthrough
CT: control target
= control target key end

     0   :  { %8 = vsyncpa [#allocation3], 0  ;;  %s1013_s0 = inlined_call_operand.hbm [shape: f32[8,512], index: 0, kind: input, shape index: {}]   ;;  %s1014_s1 = inlined_call_operand.hbm [shape: f32[8,40], index: 1, kind: input, shape index: {}]   ;;  %s1015_s2 = inlined_call_operand.hbm [shape: f32[4,256], index: 2, kind: input, shape index: {}]   ;;  %s1016_s3 = inlined_call_operand.hbm [shape: f32[8,512], index: 3, kind: output, shape index: {}]  }
   0x1   :  { %10 = vsyncpa [#allocation3 + $0x1], 0 }
   0x2   :  { %11 = vsyncpa [#allocation6], 0 }
   0x3   :  { %12 = vsyncpa [#allocation4], 0 }
   0x4   :  { %14 = vsyncpa [#allocation4 + $0x1], 0  ;;  %s775_s12 = smov 0   ;;  %s777_s13 = smov 0  }
   0x5   :  { %s779_s14 = smov 0   ;;  %s781_s15 = smov 0  }
   0x6 LB: > { %s796_s16 = sadd.s32 4294967295, %s744_s15   ;;  %s487_s17 = sadd.s32 4294967294, %s744_s15   ;;  %s744_s15 = sphi %s781_s15, %s1036_s15   ;;  %s740_s14 = sphi %s779_s14, %s1035_s14   ;;  %s736_s13 = sphi %s777_s13, %s1034_s13   ;;  %s732_s12 = sphi %s775_s12, %s1033_s12  }
   0x7   : > { %p40_p0 = scmp.ne.s32.totalorder %s736_s13, %s732_s12  ;;  %p1017_p1 = scmp.eq.s32.totalorder %s796_s16, 0 }
   0x8   : > { %p112_p3 = scmp.eq.s32.totalorder %s487_s17, 1  ;;  %p488_p5 = scmp.ge.s32.totalorder %s744_s15, 1 }
   0x9   : > { %p805_p4 = por %p1017_p1, %p40_p0  ;;  %p119_p7 = scmp.lt.s32.totalorder %s744_s15, 3 }
   0xa   : > { %p810_p6 = por %p112_p3, %p40_p0  ;;  %s746_s21 = smov [#allocation5]  }
   0xb   : > { %s1020_s18 = scalar_select %p805_p4, 1, 0 }
   0xc   : > { %s1021_s19 = scalar_select %p810_p6, 1, 0 }
   0xd   : > { %p815_p8 = pnand %p488_p5, %p119_p7  ;;  %s132_s22 = sshll.u32 %s746_s21, 4  ;;  %s133_s22 = int_to_ptr.vmem [resolvable:$true] %s132_s22 }
   0xe   : > { %s747_s23 = smov [#allocation7]   ;;  %s831_s26 = sadd.s32 1, %s744_s15  }
   0xf   : > { %s1022_s20 = scalar_select %p815_p8, 1, 0 }
  0x10   : > { %p528_p10 = pneg %p815_p8  ;;  %s143_s24 = sshll.u32 %s747_s23, 4  ;;  %s828_s24 = int_to_ptr.vmem [resolvable:$true] %s143_s24 }
  0x11   : > { %s24_s27 = ssub.s32 %s744_s15, %s831_s26  ;;  %s588_s30 = scalar_lea.hbm %s1014_s1, 128 }
  0x12   : > { %p824_p11 = pnand %p528_p10, %p1017_p1  ;;  %p589_p12 = scmp.ne.s32.totalorder %s1014_s1, %s588_s30 }
  0x13   : > { %p595_p5 = scmp.lt.u32.totalorder %s588_s30, %s1014_s1 }
  0x14   : > { %p590_p13 = pneg %p824_p11 }
  0x16   : > { %p591_p0 = pnand %p590_p13, %p589_p12 }
  0x18   : > { %p592_p3 = pneg %p591_p0 }
  0x1a   : > { %p597_p7 = pnand %p595_p5, %p592_p3 }
  0x1c   : > { %600 = shalt.err (!%p597_p7)
}
  0x1d   : > { %s601_s8 = scalar_lea.vmem %s133_s22, 128  ;;  %p609_p2 = scmp.lt.s32.totalorder %s133_s22, %s133_s22 }
  0x1e   : > { %p602_p10 = scmp.ne.s32.totalorder %s133_s22, %s601_s8  ;;  %p610_p6 = scmp.lt.s32.totalorder %s601_s8, %s601_s8 }
  0x20   : > { %p604_p9 = pnand %p602_p10, %p590_p13  ;;  %p611_p4 = por %p610_p6, %p609_p2 }
  0x22   : > { %p605_p1 = pneg %p604_p9 }
  0x24   : > { %p612_p8 = pnand %p611_p4, %p605_p1 }
  0x26   : > { %615 = shalt.err (!%p612_p8)
}
  0x27   : > { %531 = dma.hbm_to_vmem [thread:$0]  (!%p824_p11), %s1014_s1, 128, %s133_s22, [#allocation6]  }
  0x28   : > { %s616_s21 = scalar_lea.hbm %s1015_s2, 128 }
  0x29   : > { %p617_p9 = scmp.ne.s32.totalorder %s1015_s2, %s616_s21  ;;  %p623_p4 = scmp.lt.u32.totalorder %s616_s21, %s1015_s2 }
  0x2b   : > { %p619_p2 = pnand %p617_p9, %p590_p13 }
  0x2d   : > { %p620_p1 = pneg %p619_p2 }
  0x2f   : > { %p625_p6 = pnand %p623_p4, %p620_p1 }
  0x31   : > { %628 = shalt.err (!%p625_p6)
}
  0x32   : > { %s629_s22 = scalar_lea.vmem %s828_s24, 128  ;;  %p637_p3 = scmp.lt.s32.totalorder %s828_s24, %s828_s24 }
  0x33   : > { %p630_p8 = scmp.ne.s32.totalorder %s828_s24, %s629_s22  ;;  %p638_p5 = scmp.lt.s32.totalorder %s629_s22, %s629_s22 }
  0x35   : > { %p632_p12 = pnand %p630_p8, %p590_p13  ;;  %p639_p7 = por %p638_p5, %p637_p3 }
  0x37   : > { %p633_p0 = pneg %p632_p12 }
  0x39   : > { %p640_p10 = pnand %p639_p7, %p633_p0 }
  0x3b   : > { %643 = shalt.err (!%p640_p10)
}
  0x3c   : > { %534 = dma.hbm_to_vmem [thread:$0]  (!%p824_p11), %s1015_s2, 128, %s828_s24, [#allocation6]  }
  0x3d   : > { %p25_p13 = scmp.eq.s32.totalorder %s24_s27, 0  ;;  %s27_s6 = sadd.s32 1, %s740_s14 }
  0x3e   : > { %p34_p9 = scmp.ne.s32.totalorder %s740_s14, %s736_s13  ;;  %p35_p2 = scmp.eq.s32.totalorder %s744_s15, 0 }
  0x3f   : > { %s890_s25 = scalar_select %p25_p13, %s740_s14, %s27_s6  }
  0x40   : > { %p36_p1 = por %p35_p2, %p34_p9  ;;  %p1024_p4 = scmp.eq.s32.totalorder %s796_s16, 1 }
  0x41   : > { %p545_p8 = scmp.lt.s32.totalorder %s744_s15, 2  ;;  %s154_s8 = sand.u32 1, %s740_s14  }
  0x42   : > { %p894_p6 = por %p1024_p4, %p34_p9  ;;  %s492_s9 = sshll.u32 %s154_s8, 4 }
  0x43   : > { %s506_s10 = sshll.u32 %s744_s15, 8  ;;  %s158_s27 = scalar_lea.vmem [#allocation2], %s492_s9 }
  0x44   : > { %s904_s24 = scalar_lea.hbm %s1013_s0, %s506_s10  ;;  %s166_s21 = sshll.u32 %s158_s27, 4  ;;  %s906_s21 = int_to_ptr.vmem [resolvable:$true] %s166_s21 }
  0x45   : > { %p908_p11 = pnand %p545_p8, %p36_p1  ;;  %s155_s28 = scalar_lea.sflag [#allocation3], %s154_s8 }
  0x46   : > { %s644_s29 = scalar_lea.hbm %s904_s24, 256  ;;  %s649_s4 = scalar_lea.hbm %s1013_s0, 512 }
  0x47   : > { %p645_p12 = scmp.ne.s32.totalorder %s904_s24, %s644_s29  ;;  %p646_p0 = pneg %p908_p11 }
  0x48   : > { %p650_p7 = scmp.lt.u32.totalorder %s904_s24, %s1013_s0  ;;  %p651_p10 = scmp.lt.u32.totalorder %s649_s4, %s644_s29 }
  0x49   : > { %p647_p3 = pnand %p646_p0, %p645_p12  ;;  %p653_p9 = scmp.lt.u32.totalorder %s644_s29, %s904_s24 }
  0x4a   : > { %p652_p13 = por %p651_p10, %p650_p7 }
  0x4b   : > { %p648_p5 = pneg %p647_p3 }
  0x4c   : > { %p654_p2 = por %p653_p9, %p652_p13 }
  0x4e   : > { %p655_p1 = pnand %p654_p2, %p648_p5 }
  0x50   : > { %658 = shalt.err (!%p655_p1)
}
  0x51   : > { %s659_s8 = scalar_lea.vmem %s906_s21, 256  ;;  %s748_s9 = smov [#allocation2]  }
  0x52   : > { %p660_p4 = scmp.ne.s32.totalorder %s906_s21, %s659_s8  ;;  %s664_s10 = sshll.u32 %s748_s9, 4  ;;  %s665_s10 = int_to_ptr.vmem [resolvable:$false] %s664_s10 }
  0x53   : > { %s666_s11 = scalar_lea.vmem %s665_s10, 512  ;;  %p667_p3 = scmp.lt.s32.totalorder %s906_s21, %s665_s10 }
  0x54   : > { %p662_p8 = pnand %p660_p4, %p646_p0  ;;  %p668_p7 = scmp.lt.s32.totalorder %s666_s11, %s659_s8 }
  0x56   : > { %p663_p12 = pneg %p662_p8  ;;  %p669_p10 = por %p668_p7, %p667_p3 }
  0x58   : > { %p670_p13 = pnand %p669_p10, %p663_p12 }
  0x5a   : > { %673 = shalt.err (!%p670_p13)
}
  0x5b   : > { %538 = dma.hbm_to_vmem [thread:$0]  (!%p908_p11), %s904_s24, 256, %s906_s21, %s155_s28  }
  0x5c   : > { %p1027_p5 = scmp.ne.s32.totalorder %s1022_s20, 0 }
  0x5d   : > { %s940_s17 = sand.u32 (!%p1027_p5), 1, %s736_s13   ;;  %p1028_p0 = scmp.ne.s32.totalorder (!%p1027_p5), %s1020_s18, 0 }
  0x5e   : > { %175 = sbr.rel (%p1027_p5) target bundleno = 467 (0x1d3), region = 32  ;;  %s496_s27 = sshll.u32 (!%p1027_p5), %s940_s17, 4 }
  0x5f   : > { %s178_s29 = scalar_lea.sflag (!%p1027_p5), [#allocation3], %s940_s17  ;;  %s181_s30 = scalar_lea.vmem (!%p1027_p5), [#allocation2], %s496_s27 }
  0x65   : > { %719 = dma.done.wait (%p1028_p0), %s178_s29, 256  }
  0x66   : > { %721 = vsyncadd (%p1028_p0), %s178_s29, 4294967040  ;;  %p1029_p11 = scmp.eq.s32.totalorder %s796_s16, 0 }
  0x68   : > { %723 = dma.done.wait (%p1029_p11), [#allocation6], 256   ;;  %p1030_p9 = pmov %p1029_p11 }
  0x69   : > { %v954_v0 = vld [vmem:[%s181_s30] sm:$0xff]  ;;  %s749_s20 = smov 1   ;;  %s750_s24 = smov 16   ;;  %v215_v1 = vld [vmem:[%s181_s30 + $0x8] sm:$0xff]  ;;  %v751_v2 = vmov 0.0   ;;  %v227_v3 = vlaneseq  ;;  %vm306_vm4 = vcmask 326656  }
  0x6a   : > { %725 = vsyncadd (%p1030_p9), [#allocation6], 4294967040  ;;  %245 = vrot.lane.b32.xlu1 %v954_v0, %s749_s20  ;;  %223 = vrot.lane.b32.xlu0 %v954_v0, %s750_s24  ;;  %s752_s18 = smov 127   ;;  %s753_s21 = smov 112   ;;  %v305_v48 = vld [vmem:[#allocation5] sm:$0xff] }
  0x6b   : > { %374 = vmatprep.mubr.f32.mxu0 %v751_v2  ;;  %v234_v4 = vshrl.u32 %v227_v3, 7  ;;  %v228_v5 = vand.u32 127, %v227_v3  ;;  %v216_v8 = vld [vmem:[#allocation7] ss:$4 sm:$0x3]  ;;  %s211_s23 = scalar_lea.vmem [#allocation8], %s496_s27 }
  0x6c   : > { %v220_v9 = vld [vmem:[#allocation7 + $0x2] ss:$4 sm:$0x3]  ;;  %v218_v12 = vld [vmem:[#allocation7 + $0x1] ss:$4 sm:$0x3] }
  0x6d   : > { %v235_v6 = vsub.s32 0, %v234_v4  ;;  %v239_v7 = vsub.s32 1, %v234_v4  ;;  %vm249_vm0 = vcmp.lt.s32.totalorder %v228_v5, 1  ;;  %vm229_vm1 = vcmp.lt.s32.totalorder %v228_v5, 16  ;;  %s398_s28 = sshll.u32 %s211_s23, 4  ;;  %s507_s22 = sshll.u32 %s796_s16, 8  ;;  %s966_s28 = int_to_ptr.vmem [resolvable:$true] %s398_s28 }
  0x6e   : > { %247 = vrot.lane.b32.xlu1 %v215_v1, %s749_s20  ;;  %225 = vrot.lane.b32.xlu0 %v215_v1, %s750_s24  ;;  %vm269_vm2 = vcmp.lt.s32.totalorder %v228_v5, 127  ;;  %v222_v29 = vld [vmem:[#allocation7 + $0x3] ss:$4 sm:$0x3]  ;;  %vm289_vm3 = vcmp.lt.s32.totalorder %v228_v5, 112  ;;  %s971_s6 = scalar_lea.hbm %s1016_s3, %s507_s22  ;;  %s384_s8 = scalar_lea.sflag [#allocation4], %s940_s17 }
  0x6f   : > { %v256_v13 = vrot.slane %v216_v8, %v235_v6  ;;  %v236_v14 = vrot.slane %v220_v9, %v235_v6  ;;  %v240_v15 = vrot.slane %v220_v9, %v239_v7  ;;  %v260_v16 = vrot.slane %v216_v8, %v239_v7  ;;  %s674_s9 = scalar_lea.vmem %s966_s28, 256  ;;  %s754_s16 = smov [#allocation8]  }
  0x70   : > { %v276_v19 = vrot.slane %v218_v12, %v235_v6  ;;  %v280_v20 = vrot.slane %v218_v12, %v239_v7  ;;  %v300_v38 = vrot.slane %v222_v29, %v239_v7  ;;  %v296_v39 = vrot.slane %v222_v29, %v235_v6  ;;  %p675_p2 = scmp.ne.s32.totalorder %s966_s28, %s674_s9  ;;  %s678_s10 = sshll.u32 %s754_s16, 4  ;;  %s679_s10 = int_to_ptr.vmem [resolvable:$false] %s678_s10 }
  0x71   : > { %s680_s11 = scalar_lea.vmem %s679_s10, 512  ;;  %p681_p8 = scmp.lt.s32.totalorder %s966_s28, %s679_s10 }
  0x72   : > { %267 = vrot.lane.b32.xlu1 %v215_v1, %s752_s18  ;;  %265 = vrot.lane.b32.xlu0 %v954_v0, %s752_s18  ;;  %p676_p1 = pnand %p675_p2, %p894_p6  ;;  %p682_p12 = scmp.lt.s32.totalorder %s680_s11, %s674_s9 }
  0x74   : > { %p677_p4 = pneg %p676_p1  ;;  %p683_p3 = por %p682_p12, %p681_p8 }
  0x76   : > { %287 = vrot.lane.b32.xlu1 %v215_v1, %s753_s21  ;;  %285 = vrot.lane.b32.xlu0 %v954_v0, %s753_s21  ;;  %p684_p7 = pnand %p683_p3, %p677_p4 }
  0xdc   : > { %v246_v10 = vpop.permute.xlu1 %245  ;;  %v224_v11 = vpop.permute.xlu0 %223 }
  0xe0   : > { %v248_v17 = vpop.permute.xlu1 %247  ;;  %v226_v18 = vpop.permute.xlu0 %225 }
  0xe1   : > { %v250_v21 = vsel %vm249_vm0, %v246_v10, %v248_v17  ;;  %v251_v22 = vsel %vm249_vm0, %v248_v17, %v246_v10  ;;  %v230_v23 = vsel %vm229_vm1, %v224_v11, %v226_v18  ;;  %v231_v24 = vsel %vm229_vm1, %v226_v18, %v224_v11 }
  0xe2   : > { %v263_v25 = vmul.f32 %v256_v13, %v251_v22  ;;  %v243_v26 = vmul.f32 %v236_v14, %v231_v24  ;;  %v244_v27 = vmul.f32 %v240_v15, %v230_v23  ;;  %v264_v28 = vmul.f32 %v260_v16, %v250_v21 }
  0xe4   : > { %v268_v30 = vpop.permute.xlu1 %267  ;;  %v266_v31 = vpop.permute.xlu0 %265  ;;  %v508_v32 = vpack.c.bf16 %v264_v28, %v244_v27  ;;  %v510_v33 = vpack.c.bf16 %v263_v25, %v243_v26 }
  0xe5   : > { %v270_v34 = vsel %vm269_vm2, %v266_v31, %v268_v30  ;;  %v271_v35 = vsel %vm269_vm2, %v268_v30, %v266_v31 }
  0xe6   : > { %v283_v36 = vmul.f32 %v276_v19, %v270_v34  ;;  %v284_v37 = vmul.f32 %v280_v20, %v271_v35  ;;  %509 = vmatprep.subr.bf16.mxu0 %v508_v32 }
  0xe7   : > { %511 = vmatpush1.bf16.msra.mxu0 %v510_v33 }
  0xe8   : > { %v288_v40 = vpop.permute.xlu1 %287  ;;  %v512_v41 = vpack.c.bf16 %v284_v37, %v215_v1  ;;  %v286_v42 = vpop.permute.xlu0 %285  ;;  %v514_v43 = vpack.c.bf16 %v283_v36, %v954_v0 }
  0xe9   : > { %v290_v44 = vsel %vm289_vm3, %v286_v42, %v288_v40  ;;  %v291_v45 = vsel %vm289_vm3, %v288_v40, %v286_v42 }
  0xea   : > { %513 = vmatprep.subr.bf16.mxu0 %v512_v41  ;;  %v304_v46 = vmul.f32 %v300_v38, %v291_v45  ;;  %v303_v47 = vmul.f32 %v296_v39, %v290_v44 }
  0xeb   : > { %515 = vmatpush1.bf16.msra.mxu0 %v514_v43 }
  0xec   : > { %318 = vmatprep.subr.mxu0 %v304_v46 }
  0xef   : > { %319 = vmatpush1.msra.mxu0 %v303_v47 }
  0xf0   : > { %500 = vmatmul.mubr.msk.f32.vlgmr.msra.gmra.mrb[0].mxu0 %vm306_vm4, %v305_v48 }
 0x1c3   : > { %v376_v49 = vpop.f32.mrb[0].mxu0 }
 0x1c4   : > { %381 = vst [vmem:[%s211_s23] sm:$0xff] %v376_v49  ;;  %v378_v50 = vpop.f32.mrb[1].mxu0 }
 0x1c5   : > { %382 = vst [vmem:[%s211_s23 + $0x8] sm:$0xff] %v378_v50 }
 0x1c6   : > { %687 = shalt.err (!%p684_p7)
}
 0x1c7   : > { %s688_s17 = scalar_lea.hbm %s971_s6, 256  ;;  %s692_s30 = scalar_lea.hbm %s1016_s3, 512 }
 0x1c8   : > { %p689_p10 = scmp.ne.s32.totalorder %s971_s6, %s688_s17  ;;  %p693_p0 = scmp.lt.u32.totalorder %s971_s6, %s1016_s3 }
 0x1c9   : > { %p694_p11 = scmp.lt.u32.totalorder %s692_s30, %s688_s17  ;;  %p696_p2 = scmp.lt.u32.totalorder %s688_s17, %s971_s6 }
 0x1ca   : > { %p690_p13 = pnand %p689_p10, %p894_p6 }
 0x1cb   : > { %p695_p9 = por %p694_p11, %p693_p0 }
 0x1cc   : > { %p691_p5 = pneg %p690_p13 }
 0x1cd   : > { %p697_p1 = por %p696_p2, %p695_p9 }
 0x1cf   : > { %p698_p4 = pnand %p697_p1, %p691_p5 }
 0x1d1   : > { %701 = shalt.err (!%p698_p4)
}
 0x1d2   : > { %526 = dma.vmem_to_hbm [thread:$0]  (%p894_p6), %s966_s28, 256, %s971_s6, %s384_s8  }
 0x1d3 PF: > { %s410_s18 = sand.u32 1, %s732_s12   ;;  %p1031_p8 = scmp.ne.s32.totalorder %s1021_s19, 0 }
 0x1d4   : > { %p1032_p12 = scmp.ge.s32.totalorder %s744_s15, 2  ;;  %s411_s21 = scalar_lea.sflag [#allocation4], %s410_s18 }
 0x1d6   : > { %p540_p3 = pnand %p1032_p12, %p1031_p8 }
 0x1d8   : > { %727 = dma.done.wait (!%p540_p3), %s411_s21, 256  }
 0x1d9   : > { %729 = vsyncadd (!%p540_p3), %s411_s21, 4294967040  ;;  %p17_p7 = scmp.ge.s32.totalorder %s831_s26, 4   ;;  %s1033_s12 = smov %s736_s13 }
 0x1da   : > { %s1034_s13 = smov %s740_s14  ;;  %s1035_s14 = smov %s890_s25 }
 0x1db   : > { %s1036_s15 = smov %s831_s26  ;;  %19 = sbr.rel (!%p17_p7) target bundleno = 6 (0x6), region = 88 }
 0x1e2   :  { %416 = vsyncpa [#allocation3], 1 }
 0x1e3   :  { %418 = vsyncpa [#allocation3 + $0x1], 1 }
 0x1e4   :  { %419 = vsyncpa [#allocation6], 1 }
 0x1e5   :  { %420 = vsyncpa [#allocation4], 1 }
 0x1e6   :  { %422 = vsyncpa [#allocation4 + $0x1], 1 }

</bundles_post_ra>
